<compile_context>
chip_gen: v5e
topology: v5e:2x2
jax: 0.10.0
libtpu: 0.0.40
codegen_flags: <defaults>
</compile_context>

<pallas_src>
import jax
import jax.numpy as jnp
from jax import lax
from jax.experimental import pallas as pl
from jax.experimental.pallas import tpu as pltpu


# ----------------------------- Pallas kernel -------------------------------

def _cdist_kernel(x_ref, xsq_ref, p_ref, psq_ref, o_ref):
    # x_ref:   (TM, D)  query-row tile (native dtype)
    # xsq_ref: (TM, 1)  precomputed ||x||^2 (f32, hoisted to the wrapper)
    # p_ref:   (TN, D)  point-row tile (resident along the inner row axis)
    # psq_ref: (1, TN)  precomputed ||p||^2 (f32, hoisted to the wrapper)
    # o_ref:   (TM, TN) distance tile
    #
    # x @ p.T expressed as a contraction over the last dim of BOTH operands:
    # no in-kernel transpose / relayout, MXU accumulates in f32.
    xp = lax.dot_general(
        x_ref[...], p_ref[...],
        dimension_numbers=(((1,), (1,)), ((), ())),
        preferred_element_type=jnp.float32,
    )                                                        # (TM, TN)

    # ||x||^2 + ||p||^2 - 2 x.p, clamped at 0 against fp rounding.
    # NOTE: the norm-expansion form loses precision for near-coincident points
    # relative to torch.cdist's direct-difference mode (inherent trade-off).
    d2 = jnp.maximum(xsq_ref[...] + psq_ref[...] - 2.0 * xp, 0.0)
    o_ref[...] = jnp.sqrt(d2).astype(o_ref.dtype)


def _round_up(a, b):
    return ((a + b - 1) // b) * b


def _cdiv(a, b):
    return (a + b - 1) // b


def pallas_cdist(x, points, tm=512, tn=1024, out_dtype=None,
                 vmem_limit_bytes=48 * 1024 * 1024,
                 vmem_tile_budget=32 * 1024 * 1024):
    """Pairwise Euclidean distances between rows of x (M, D) and points (N, D)."""
    M, D = x.shape
    N, Dp = points.shape
    assert D == Dp, "feature dims must match"
    if out_dtype is None:
        out_dtype = x.dtype     # bf16 in -> bf16 out halves writeback bytes
    in_itemsize = jnp.dtype(x.dtype).itemsize
    out_itemsize = jnp.dtype(out_dtype).itemsize

    # ---- tile selection (no input/output padding) --------------------------
    # Row tile: multiple of 8 sublanes (or exactly M); column tile: multiple of
    # 128 lanes (or exactly N).  Balance tiles against the true M/N so partial
    # edge blocks stay small instead of padding N up to a full default tile.
    if M <= tm:
        tm = M
    else:
        tm = min(tm, _round_up(_cdiv(M, _cdiv(M, tm)), 8))
    if N <= tn:
        tn = N
    else:
        tn = min(tn, _round_up(_cdiv(N, _cdiv(N, tn)), 128))

    # Keep the double-buffered tile footprint under a conservative budget so
    # large D cannot blow past v7x's 64 MiB VMEM (shrink tn first, then tm;
    # shrunk values stay multiples of 128 / 8 respectively).
    def _tile_bytes(tm_, tn_):
        return 2 * (tm_ * D * in_itemsize          # x tile
                    + tn_ * D * in_itemsize        # point tile
                    + tm_ * 4 + tn_ * 4            # hoisted norms
                    + tm_ * tn_ * out_itemsize)    # output tile

    while _tile_bytes(tm, tn) > vmem_tile_budget and tn > 128:
        tn = max(128, _round_up(tn, 256) // 2)
    while _tile_bytes(tm, tn) > vmem_tile_budget and tm > 8:
        tm = max(8, _round_up(tm, 16) // 2)

    # v7x has 2 TensorCores per chip: if the whole problem fits in one tile,
    # split the row axis so at least one "parallel" grid axis has >= 2 blocks.
    if _cdiv(M, tm) == 1 and _cdiv(N, tn) == 1 and M > 8:
        tm = max(8, _round_up(_cdiv(M, 2), 8))

    # ---- hoisted squared norms (computed once, outside the kernel) ---------
    x_sq = jnp.sum(jnp.square(x.astype(jnp.float32)), axis=-1,
                   keepdims=True)                                  # (M, 1)
    p_sq = jnp.sum(jnp.square(points.astype(jnp.float32)),
                   axis=-1)[None, :]                               # (1, N)

    # Columns OUTER, rows INNER: the (tn, D) point tile and its norms are
    # invariant along the inner row loop, so Pallas keeps them resident.
    n_col = _cdiv(N, tn)
    n_row = _cdiv(M, tm)
    grid = (n_col, n_row)

    cost = pl.CostEstimate(
        flops=2 * M * N * D,
        transcendentals=M * N,                                   # one sqrt / elem
        bytes_accessed=(n_col * (M * D * in_itemsize + M * 4)    # x re-read per col tile
                        + N * D * in_itemsize + N * 4            # points read once
                        + M * N * out_itemsize),                 # output writeback
    )

    return pl.pallas_call(
        _cdist_kernel,
        out_shape=jax.ShapeDtypeStruct((M, N), out_dtype),
        grid_spec=pltpu.PrefetchScalarGridSpec(
            num_scalar_prefetch=0,
            grid=grid,
            in_specs=[
                pl.BlockSpec((tm, D), lambda j, i: (i, 0)),   # x row tile
                pl.BlockSpec((tm, 1), lambda j, i: (i, 0)),   # hoisted ||x||^2
                pl.BlockSpec((tn, D), lambda j, i: (j, 0)),   # point col tile (resident)
                pl.BlockSpec((1, tn), lambda j, i: (0, j)),   # hoisted ||p||^2
            ],
            out_specs=pl.BlockSpec((tm, tn), lambda j, i: (i, j)),
        ),
        compiler_params=pltpu.CompilerParams(
            dimension_semantics=("parallel", "parallel"),
            vmem_limit_bytes=vmem_limit_bytes,
        ),
        cost_estimate=cost,
    )(x, x_sq, points, p_sq)


# --------------------------- module translation ----------------------------

def minimum_matching(x_old, x_new, epsilon):
    if x_old is None:
        return x_new
    # TODO(synk): scipy.optimize.linear_sum_assignment (Hungarian algorithm) is
    # a sequential combinatorial solver with no clean Pallas/TPU equivalent;
    # the module as instantiated only exercises the old_points=None branch.
    raise NotImplementedError("linear_sum_assignment branch not implemented")


class BestMatchingSig:
    """JAX/Pallas port of the PyTorch BestMatchingSig module."""

    def __init__(self, old_points, new_points):
        # Deterministic parameter init, exactly as in the PyTorch __init__.
        self.theta = jnp.asarray(-5.0, dtype=jnp.float32)
        self.old_points = old_points
        self.new_points = new_points

    def __call__(self, x):
        epsilon = jax.nn.sigmoid(self.theta) ** 2            # scalar, ~4.5e-5 at init
        point_update = minimum_matching(self.old_points, self.new_points, epsilon)
        return pallas_cdist(x, point_update)                 # (M, N) distances


# --------------------------------- main -------------------------------------

if __name__ == "__main__":
    key = jax.random.PRNGKey(0)
    k_x, k_p = jax.random.split(key)

    M, N, D = 16, 8, 4                                       # small demo shapes
    x = jax.random.normal(k_x, (M, D), dtype=jnp.float32)
    new_points = jax.random.normal(k_p, (N, D), dtype=jnp.float32)

    model = BestMatchingSig(old_points=None, new_points=new_points)
    out = model(x)
    out = jax.block_until_ready(out)

    # Pure-JAX reference for the same forward pass.
    diff = x[:, None, :] - new_points[None, :, :]
    ref = jnp.sqrt(jnp.sum(diff * diff, axis=-1))
    assert out.shape == (M, N)
    assert jnp.allclose(out, ref, atol=1e-4, rtol=1e-5)

    print("KERNEL_OK")
</pallas_src>

<mosaic_0001>
module attributes {stable_mosaic.version = 11 : i64} {
  func.func @_cdist_kernel(%arg0: i32, %arg1: i32, %arg2: memref<8x4xf32, #tpu.memory_space<vmem>>, %arg3: memref<8x1xf32, #tpu.memory_space<vmem>>, %arg4: memref<8x4xf32, #tpu.memory_space<vmem>>, %arg5: memref<1x8xf32, #tpu.memory_space<vmem>>, %arg6: memref<8x8xf32, #tpu.memory_space<vmem>>) attributes {dimension_semantics = [#tpu.dimension_semantics<parallel>, #tpu.dimension_semantics<parallel>], iteration_bounds = array<i64: 1, 2>, scalar_prefetch = 0 : i64, scratch_operands = 0 : i64, tpu.core_type = #tpu.core_type<tc>, window_params = [{transform_indices = @transform_0, window_bounds = array<i64: 8, 4>}, {transform_indices = @transform_1, window_bounds = array<i64: 8, 1>}, {transform_indices = @transform_2, window_bounds = array<i64: 8, 4>}, {transform_indices = @transform_3, window_bounds = array<i64: 1, 8>}, {transform_indices = @transform_4, window_bounds = array<i64: 8, 8>}]} {
    %c0 = arith.constant 0 : index
    %c0_0 = arith.constant 0 : index
    %0 = vector.load %arg2[%c0, %c0_0] : memref<8x4xf32, #tpu.memory_space<vmem>>, vector<8x4xf32>
    %c0_1 = arith.constant 0 : index
    %c0_2 = arith.constant 0 : index
    %1 = vector.load %arg4[%c0_1, %c0_2] : memref<8x4xf32, #tpu.memory_space<vmem>>, vector<8x4xf32>
    %cst = arith.constant dense<0.000000e+00> : vector<8x8xf32>
    %2 = tpu.matmul %0, %1, %cst {dimension_numbers = #tpu.dot_dimension_numbers<[1], [1], [0], [0], [0, 0, 1, 0], [], []>} : vector<8x4xf32>, vector<8x4xf32>, vector<8x8xf32> -> vector<8x8xf32>
    %c0_3 = arith.constant 0 : index
    %c0_4 = arith.constant 0 : index
    %3 = vector.load %arg3[%c0_3, %c0_4] : memref<8x1xf32, #tpu.memory_space<vmem>>, vector<8x1xf32>
    %c0_5 = arith.constant 0 : index
    %c0_6 = arith.constant 0 : index
    %4 = vector.load %arg5[%c0_5, %c0_6] : memref<1x8xf32, #tpu.memory_space<vmem>>, vector<1x8xf32>
    %5 = vector.broadcast %3 : vector<8x1xf32> to vector<8x8xf32>
    %6 = vector.broadcast %4 : vector<1x8xf32> to vector<8x8xf32>
    %7 = arith.addf %5, %6 : vector<8x8xf32>
    %cst_7 = arith.constant 2.000000e+00 : f32
    %8 = vector.broadcast %cst_7 : f32 to vector<8x8xf32>
    %9 = arith.mulf %8, %2 : vector<8x8xf32>
    %10 = arith.subf %7, %9 : vector<8x8xf32>
    %cst_8 = arith.constant 0.000000e+00 : f32
    %11 = vector.broadcast %cst_8 : f32 to vector<8x8xf32>
    %12 = arith.maximumf %10, %11 : vector<8x8xf32>
    %13 = math.sqrt %12 : vector<8x8xf32>
    %c0_9 = arith.constant 0 : index
    %c0_10 = arith.constant 0 : index
    %14 = vector.load %arg6[%c0_9, %c0_10] : memref<8x8xf32, #tpu.memory_space<vmem>>, vector<8x8xf32>
    tpu.vector_store %arg6[%c0_9, %c0_10], %13 {strides = array<i32>} : memref<8x8xf32, #tpu.memory_space<vmem>>, vector<8x8xf32>,
    return
  }
  func.func @transform_0(%arg0: i32, %arg1: i32) -> (i32, i32) {
    %c0_i32 = arith.constant 0 : i32
    %c0_i32_0 = arith.constant 0 : i32
    return %arg1, %c0_i32 : i32, i32
  }
  func.func @transform_1(%arg0: i32, %arg1: i32) -> (i32, i32) {
    %c0_i32 = arith.constant 0 : i32
    %c0_i32_0 = arith.constant 0 : i32
    return %arg1, %c0_i32 : i32, i32
  }
  func.func @transform_2(%arg0: i32, %arg1: i32) -> (i32, i32) {
    %c0_i32 = arith.constant 0 : i32
    %c0_i32_0 = arith.constant 0 : i32
    return %arg0, %c0_i32 : i32, i32
  }
  func.func @transform_3(%arg0: i32, %arg1: i32) -> (i32, i32) {
    %c0_i32 = arith.constant 0 : i32
    %c0_i32_0 = arith.constant 0 : i32
    return %c0_i32, %arg0 : i32, i32
  }
  func.func @transform_4(%arg0: i32, %arg1: i32) -> (i32, i32) {
    %c0_i32 = arith.constant 0 : i32
    return %arg1, %arg0 : i32, i32
  }
}

</mosaic_0001>

<bundles_post_ra>
// kernel: tpu_custom_call.1
= control target key start
LH: loop header
LB: loop body
LE: loop exit
PB: predicated region body
PF: predicated region fallthrough
CT: control target
= control target key end

     0   :  { %s522_s15 = smov 0   ;;  %s524_s16 = smov 0   ;;  %s569_s0 = inlined_call_operand.vmem [shape: f32[16,4], index: 0, kind: input, shape index: {}]   ;;  %s570_s1 = inlined_call_operand.vmem [shape: f32[16,1], index: 1, kind: input, shape index: {}]   ;;  %s571_s2 = inlined_call_operand.vmem [shape: f32[8,4], index: 2, kind: input, shape index: {}]   ;;  %s572_s3 = inlined_call_operand.vmem [shape: f32[1,8], index: 3, kind: input, shape index: {}]   ;;  %s573_s4 = inlined_call_operand.vmem [shape: f32[16,8], index: 4, kind: output, shape index: {}]  }
   0x1   :  { %s526_s17 = smov 0  }
   0x2 LB: > { %s23_s18 = sadd.s32 1, %s490_s16  ;;  %p435_p0 = scmp.ge.s32.totalorder %s494_s17, 1  ;;  %s494_s17 = sphi %s526_s17, %s14_s17   ;;  %s490_s16 = sphi %s524_s16, %s575_s16   ;;  %s486_s15 = sphi %s522_s15, %s574_s15  }
   0x3   : > { %p24_p1 = scmp.ge.s32.totalorder %s23_s18, 2  ;;  %p201_p2 = scmp.lt.s32.totalorder %s494_s17, 3 }
   0x5   : > { %s577_s18 = smov (%p24_p1, %s23_s18), 0  ;;  %p202_p3 = pnand %p435_p0, %p201_p2 }
   0x6   : > { %p239_p4 = scmp.lt.s32.totalorder (!%p202_p3), %s486_s15, 1 }
   0x7   : > { %205 = sbr.rel (%p202_p3) target bundleno = 170 (0xaa), region = 36 }
   0xc   : > { %v262_v0 = vld [vmem:[%s571_s2] sm:$0xff]  ;;  %vm263_vm0 = vcmask 31744   ;;  %v496_v1 = vmov 0   ;;  %s579_s15 = smov (!%p239_p4, %s486_s15), 1  ;;  %vm316_vm2 = vcmask 64512  }
   0xd   : > { %439 = vmatpush.xpose.msk.msra.mxu0 %vm263_vm0, %v262_v0  ;;  %468 = vset.pattern.permute.xlu0 %v496_v1  ;;  %s543_s21 = sshll.u32 %s579_s15, 3  ;;  %v469_v4 = vld [vmem:[%s572_s3] ss:$0 sm:$0xff] }
   0xe   : > { %s242_s24 = scalar_lea.vmem %s569_s0, %s543_s21  ;;  %s246_s27 = scalar_lea.vmem %s570_s1, %s543_s21 }
   0xf   : > { %v261_v2 = vld [vmem:[%s242_s24] sm:$0xff]  ;;  %s260_s6 = scalar_lea.vmem %s573_s4, %s543_s21 }
  0x10   : > { %440 = vmatmul.msk.f32.vlgmr.msra.gmra.mxu0 %vm263_vm0, %v261_v2  ;;  %v290_v3 = vld [vmem:[%s246_s27] sm:$0xff] }
  0x11   : > { %294 = vperm.xlu0 %468, %v290_v3  }
  0x83   : > { %v295_v5 = vpop.permute.xlu0 %294 }
  0x84   : > { %v300_v6 = vadd.f32 %v469_v4, %v295_v5 }
  0x8d   : > { %v287_v7 = vpop.f32.mrf.mxu0 }
  0x8e   : > { %v301_v8 = vmul.f32 2.0, %v287_v7 }
  0x90   : > { %v302_v9 = vsub.f32 %v300_v6, %v301_v8 }
  0x92   : > { %v303_v10 = vmax.f32 %v302_v9, 0.0 }
  0x94   : > { %470 = vrsqrt.f32 %v303_v10  ;;  %vm311_vm1 = vcmp.eq.f32.partialorder %v303_v10, inf  ;;  %v314_v18 = vand.u32 2147483648, %v303_v10  ;;  %vm313_vm3 = vcmp.eq.f32.partialorder %v303_v10, 0.0 }
  0x9a   : > { %v471_v11 = vpop.eup %470 }
  0x9b   : > { %v305_v12 = vmul.f32 %v471_v11, %v303_v10 }
  0x9d   : > { %v306_v13 = vmul.f32 %v471_v11, %v305_v12 }
  0x9f   : > { %v307_v14 = vmul.f32 0.5, %v306_v13 }
  0xa1   : > { %v308_v15 = vsub.f32 1.5, %v307_v14 }
  0xa3   : > { %v309_v16 = vmul.f32 %v471_v11, %v308_v15 }
  0xa5   : > { %v310_v17 = vmul.f32 %v309_v16, %v303_v10 }
  0xa7   : > { %v312_v19 = vsel %vm311_vm1, %v303_v10, %v310_v17 }
  0xa8   : > { %v315_v20 = vsel %vm313_vm3, %v314_v18, %v312_v19 }
  0xa9   : > { %317 = vst.msk [vmem:[%s260_s6] sm:$0xff] %vm316_vm2, %v315_v20 }
  0xaa PF: > { %s14_s17 = sadd.s32 1, %s494_s17   ;;  %s574_s15 = smov %s490_s16 }
  0xab   : > { %p11_p5 = scmp.ge.s32.totalorder %s14_s17, 4   ;;  %s575_s16 = smov %s577_s18 }
  0xad   :  { %13 = sbr.rel (!%p11_p5) target bundleno = 2 (0x2), region = 75 }

</bundles_post_ra>
